<compile_context>
chip_gen: v5e
topology: v5e:2x2
jax: 0.10.0
libtpu: 0.0.40
codegen_flags: <defaults>
</compile_context>

<pallas_src>
import jax
import jax.numpy as jnp
from jax.experimental import pallas as pl
from jax.experimental.pallas import tpu as pltpu

LANES = 128      # vreg lane width
SUBLANES = 8     # vreg sublane height (f32)


def _round_up(x, m):
    return ((x + m - 1) // m) * m


def _cdiv(a, b):
    return -(-a // b)


def dqn_kernel(x_ref, w1_ref, wh_ref, b_ref, o_ref):
    """x_ref : [tb, d_in]  f32   (raw input tile)
       w1_ref: [d_in, D]   bf16  (layer-1 weight, lane-padded fan_out)
       wh_ref: [3, D, D]   bf16  (layers 2..4, zero-padded)
       b_ref : [4, 1, D]   f32   (all biases, zero-padded)
       o_ref : [tb, n_out] f32   (real Q-values only)"""
    compute_dtype = w1_ref.dtype
    n_out = o_ref.shape[-1]

    # fc1: cast the f32 input to bf16 in-kernel, MXU matmul with f32 acc.
    h = x_ref[...].astype(compute_dtype)
    a = jnp.dot(h, w1_ref[...], preferred_element_type=jnp.float32)
    h = jnp.maximum(a + b_ref[0], 0.0).astype(compute_dtype)

    # fc2, fc3: matmul + bias + ReLU (f32 epilogue).
    for layer in range(2):
        a = jnp.dot(h, wh_ref[layer], preferred_element_type=jnp.float32)
        h = jnp.maximum(a + b_ref[layer + 1], 0.0).astype(compute_dtype)

    # output layer: no activation; store only the real action lanes.
    y = jnp.dot(h, wh_ref[2], preferred_element_type=jnp.float32) + b_ref[3]
    o_ref[...] = y[:, :n_out].astype(o_ref.dtype)


def pack_params(params, compute_dtype=jnp.bfloat16):
    """One-time packing at init.

    Returns:
      w1_packed : [d_in, D] compute_dtype   (layer-1 weight, fan_out padded)
      wh_packed : [3, D, D] compute_dtype   (layers 2..4, zero-padded)
      b_packed  : [4, 1, D] f32             (all biases, zero-padded)
    with D = all hidden/output feature dims rounded up to 128 lanes.
    Padded entries are exactly zero (inert through ReLU)."""
    d_in = params["w1"].shape[0]
    feat_dims = [params[f"w{i}"].shape[1] for i in range(1, 5)]
    feat_dims += [params[f"w{i}"].shape[0] for i in range(2, 5)]
    D = max(_round_up(d, LANES) for d in feat_dims)

    w1 = params["w1"]
    w1_packed = jnp.zeros((d_in, D), compute_dtype)
    w1_packed = w1_packed.at[:, : w1.shape[1]].set(w1.astype(compute_dtype))

    wh_packed = jnp.zeros((3, D, D), compute_dtype)
    for idx, i in enumerate((2, 3, 4)):
        w = params[f"w{i}"]
        wh_packed = wh_packed.at[idx, : w.shape[0], : w.shape[1]].set(
            w.astype(compute_dtype))

    b_packed = jnp.zeros((4, 1, D), jnp.float32)
    for i in range(4):
        b = params[f"b{i + 1}"]
        b_packed = b_packed.at[i, 0, : b.shape[0]].set(b.astype(jnp.float32))

    return w1_packed, wh_packed, b_packed


def dqn_forward(x, w1_packed, wh_packed, b_packed, out_actions, *, tile_b=2048):
    """x: [B, in_states] f32.  Returns Q-values [B, out_actions] f32."""
    B, d_in = x.shape
    L, D, _ = wh_packed.shape
    assert w1_packed.shape == (d_in, D)

    # Adaptive batch tile: keep tiles large (amortize per-step overhead) while
    # padding B by at most a handful of rows, never a whole tile.
    n_steps = max(1, _cdiv(B, tile_b))
    tb = _round_up(_cdiv(B, n_steps), SUBLANES)
    B_pad = n_steps * tb

    xp = x if B_pad == B else jnp.pad(x, ((0, B_pad - B), (0, 0)))

    out = pl.pallas_call(
        dqn_kernel,
        out_shape=jax.ShapeDtypeStruct((B_pad, out_actions), jnp.float32),
        grid=(n_steps,),
        in_specs=[
            # batch tile marches down the grid; last dim = full array dim (legal)
            pl.BlockSpec((tb, d_in), lambda i: (i, 0)),
            # weights / biases: constant index_map -> DMA'd once, resident in
            # VMEM across all grid steps
            pl.BlockSpec((d_in, D), lambda i: (0, 0)),
            pl.BlockSpec((L, D, D), lambda i: (0, 0, 0)),
            pl.BlockSpec((4, 1, D), lambda i: (0, 0, 0)),
        ],
        # only the real action lanes are written back (full last dim -> legal)
        out_specs=pl.BlockSpec((tb, out_actions), lambda i: (i, 0)),
        compiler_params=pltpu.CompilerParams(
            dimension_semantics=("parallel",),  # shards batch across TCs on v7x
        ),
    )(xp, w1_packed, wh_packed, b_packed)

    return out if B_pad == B else out[:B]


def init_params(key, in_states, h1, h2, h3, out_actions):
    """Mimics PyTorch nn.Linear default init (U[-1/sqrt(fan_in), 1/sqrt(fan_in)]).
    W stored [fan_in, fan_out] (transpose of nn.Linear.weight)."""
    dims = [(in_states, h1), (h1, h2), (h2, h3), (h3, out_actions)]
    params = {}
    for i, (fan_in, fan_out) in enumerate(dims, start=1):
        key, kw, kb = jax.random.split(key, 3)
        bound = 1.0 / jnp.sqrt(jnp.float32(fan_in))
        params[f"w{i}"] = jax.random.uniform(
            kw, (fan_in, fan_out), jnp.float32, minval=-bound, maxval=bound)
        params[f"b{i}"] = jax.random.uniform(
            kb, (fan_out,), jnp.float32, minval=-bound, maxval=bound)
    return params


def dqn_reference(x, params):
    h = jnp.maximum(x @ params["w1"] + params["b1"], 0.0)
    h = jnp.maximum(h @ params["w2"] + params["b2"], 0.0)
    h = jnp.maximum(h @ params["w3"] + params["b3"], 0.0)
    return h @ params["w4"] + params["b4"]


if __name__ == "__main__":
    # Small shapes consistent with the module's forward.
    batch = 8
    in_states, h1, h2, h3, out_actions = 16, 32, 64, 32, 4

    key = jax.random.PRNGKey(0)
    key, kx = jax.random.split(key)
    x = jax.random.normal(kx, (batch, in_states), dtype=jnp.float32)
    params = init_params(key, in_states, h1, h2, h3, out_actions)

    # One-time packing (lane padding, bias reshape, bf16 cast) at init.
    w1_packed, wh_packed, b_packed = pack_params(params)

    out = dqn_forward(x, w1_packed, wh_packed, b_packed, out_actions)
    out = jax.block_until_ready(out)

    ref = dqn_reference(x, params)
    assert out.shape == (batch, out_actions)
    # bf16 MXU inputs with f32 accumulation: ~0.3% relative error expected.
    assert jnp.allclose(out, ref, atol=1e-2, rtol=1e-2), "mismatch vs JAX reference"

    print("KERNEL_OK")
</pallas_src>

<mosaic_0001>
module attributes {stable_mosaic.version = 11 : i64} {
  func.func @dqn_kernel(%arg0: i32, %arg1: memref<8x16xf32, #tpu.memory_space<vmem>>, %arg2: memref<16x128xbf16, #tpu.memory_space<vmem>>, %arg3: memref<3x128x128xbf16, #tpu.memory_space<vmem>>, %arg4: memref<4x1x128xf32, #tpu.memory_space<vmem>>, %arg5: memref<8x4xf32, #tpu.memory_space<vmem>>) attributes {dimension_semantics = [#tpu.dimension_semantics<parallel>], iteration_bounds = array<i64: 1>, scalar_prefetch = 0 : i64, scratch_operands = 0 : i64, tpu.core_type = #tpu.core_type<tc>, window_params = [{transform_indices = @transform_0, window_bounds = array<i64: 8, 16>}, {pipeline_mode = #tpu.pipeline_mode<synchronous>, transform_indices = @transform_1, window_bounds = array<i64: 16, 128>}, {pipeline_mode = #tpu.pipeline_mode<synchronous>, transform_indices = @transform_2, window_bounds = array<i64: 3, 128, 128>}, {pipeline_mode = #tpu.pipeline_mode<synchronous>, transform_indices = @transform_3, window_bounds = array<i64: 4, 1, 128>}, {transform_indices = @transform_4, window_bounds = array<i64: 8, 4>}]} {
    %c0 = arith.constant 0 : index
    %c0_0 = arith.constant 0 : index
    %0 = vector.load %arg1[%c0, %c0_0] : memref<8x16xf32, #tpu.memory_space<vmem>>, vector<8x16xf32>
    %1 = arith.truncf %0 : vector<8x16xf32> to vector<8x16xbf16>
    %c0_1 = arith.constant 0 : index
    %c0_2 = arith.constant 0 : index
    %2 = vector.load %arg2[%c0_1, %c0_2] : memref<16x128xbf16, #tpu.memory_space<vmem>>, vector<16x128xbf16>
    %cst = arith.constant dense<0.000000e+00> : vector<8x128xf32>
    %3 = tpu.matmul %1, %2, %cst {dimension_numbers = #tpu.dot_dimension_numbers<[1], [0], [0], [1], [0, 0, 1, 1], [], []>} : vector<8x16xbf16>, vector<16x128xbf16>, vector<8x128xf32> -> vector<8x128xf32>
    %c0_3 = arith.constant 0 : index
    %c0_4 = arith.constant 0 : index
    %c0_5 = arith.constant 0 : index
    %4 = vector.load %arg4[%c0_3, %c0_4, %c0_5] : memref<4x1x128xf32, #tpu.memory_space<vmem>>, vector<1x1x128xf32>
    %5 = vector.shape_cast %4 : vector<1x1x128xf32> to vector<1x128xf32>
    %6 = vector.broadcast %5 : vector<1x128xf32> to vector<8x128xf32>
    %7 = arith.addf %3, %6 : vector<8x128xf32>
    %cst_6 = arith.constant 0.000000e+00 : f32
    %8 = vector.broadcast %cst_6 : f32 to vector<8x128xf32>
    %9 = arith.maximumf %7, %8 : vector<8x128xf32>
    %10 = arith.truncf %9 : vector<8x128xf32> to vector<8x128xbf16>
    %c0_7 = arith.constant 0 : index
    %c0_8 = arith.constant 0 : index
    %c0_9 = arith.constant 0 : index
    %11 = vector.load %arg3[%c0_7, %c0_8, %c0_9] : memref<3x128x128xbf16, #tpu.memory_space<vmem>>, vector<1x128x128xbf16>
    %12 = vector.shape_cast %11 : vector<1x128x128xbf16> to vector<128x128xbf16>
    %cst_10 = arith.constant dense<0.000000e+00> : vector<8x128xf32>
    %13 = tpu.matmul %10, %12, %cst_10 {dimension_numbers = #tpu.dot_dimension_numbers<[1], [0], [0], [1], [0, 0, 1, 1], [], []>} : vector<8x128xbf16>, vector<128x128xbf16>, vector<8x128xf32> -> vector<8x128xf32>
    %c1 = arith.constant 1 : index
    %c0_11 = arith.constant 0 : index
    %c0_12 = arith.constant 0 : index
    %14 = vector.load %arg4[%c1, %c0_11, %c0_12] : memref<4x1x128xf32, #tpu.memory_space<vmem>>, vector<1x1x128xf32>
    %15 = vector.shape_cast %14 : vector<1x1x128xf32> to vector<1x128xf32>
    %16 = vector.broadcast %15 : vector<1x128xf32> to vector<8x128xf32>
    %17 = arith.addf %13, %16 : vector<8x128xf32>
    %cst_13 = arith.constant 0.000000e+00 : f32
    %18 = vector.broadcast %cst_13 : f32 to vector<8x128xf32>
    %19 = arith.maximumf %17, %18 : vector<8x128xf32>
    %20 = arith.truncf %19 : vector<8x128xf32> to vector<8x128xbf16>
    %c1_14 = arith.constant 1 : index
    %c0_15 = arith.constant 0 : index
    %c0_16 = arith.constant 0 : index
    %21 = vector.load %arg3[%c1_14, %c0_15, %c0_16] : memref<3x128x128xbf16, #tpu.memory_space<vmem>>, vector<1x128x128xbf16>
    %22 = vector.shape_cast %21 : vector<1x128x128xbf16> to vector<128x128xbf16>
    %cst_17 = arith.constant dense<0.000000e+00> : vector<8x128xf32>
    %23 = tpu.matmul %20, %22, %cst_17 {dimension_numbers = #tpu.dot_dimension_numbers<[1], [0], [0], [1], [0, 0, 1, 1], [], []>} : vector<8x128xbf16>, vector<128x128xbf16>, vector<8x128xf32> -> vector<8x128xf32>
    %c2 = arith.constant 2 : index
    %c0_18 = arith.constant 0 : index
    %c0_19 = arith.constant 0 : index
    %24 = vector.load %arg4[%c2, %c0_18, %c0_19] : memref<4x1x128xf32, #tpu.memory_space<vmem>>, vector<1x1x128xf32>
    %25 = vector.shape_cast %24 : vector<1x1x128xf32> to vector<1x128xf32>
    %26 = vector.broadcast %25 : vector<1x128xf32> to vector<8x128xf32>
    %27 = arith.addf %23, %26 : vector<8x128xf32>
    %cst_20 = arith.constant 0.000000e+00 : f32
    %28 = vector.broadcast %cst_20 : f32 to vector<8x128xf32>
    %29 = arith.maximumf %27, %28 : vector<8x128xf32>
    %30 = arith.truncf %29 : vector<8x128xf32> to vector<8x128xbf16>
    %c2_21 = arith.constant 2 : index
    %c0_22 = arith.constant 0 : index
    %c0_23 = arith.constant 0 : index
    %31 = vector.load %arg3[%c2_21, %c0_22, %c0_23] : memref<3x128x128xbf16, #tpu.memory_space<vmem>>, vector<1x128x128xbf16>
    %32 = vector.shape_cast %31 : vector<1x128x128xbf16> to vector<128x128xbf16>
    %cst_24 = arith.constant dense<0.000000e+00> : vector<8x128xf32>
    %33 = tpu.matmul %30, %32, %cst_24 {dimension_numbers = #tpu.dot_dimension_numbers<[1], [0], [0], [1], [0, 0, 1, 1], [], []>} : vector<8x128xbf16>, vector<128x128xbf16>, vector<8x128xf32> -> vector<8x128xf32>
    %c3 = arith.constant 3 : index
    %c0_25 = arith.constant 0 : index
    %c0_26 = arith.constant 0 : index
    %34 = vector.load %arg4[%c3, %c0_25, %c0_26] : memref<4x1x128xf32, #tpu.memory_space<vmem>>, vector<1x1x128xf32>
    %35 = vector.shape_cast %34 : vector<1x1x128xf32> to vector<1x128xf32>
    %36 = vector.broadcast %35 : vector<1x128xf32> to vector<8x128xf32>
    %37 = arith.addf %33, %36 : vector<8x128xf32>
    %38 = vector.extract_strided_slice %37 {offsets = [0, 0], sizes = [8, 4], strides = [1, 1]} : vector<8x128xf32> to vector<8x4xf32>
    %c0_27 = arith.constant 0 : index
    %c0_28 = arith.constant 0 : index
    %39 = vector.load %arg5[%c0_27, %c0_28] : memref<8x4xf32, #tpu.memory_space<vmem>>, vector<8x4xf32>
    tpu.vector_store %arg5[%c0_27, %c0_28], %38 {strides = array<i32>} : memref<8x4xf32, #tpu.memory_space<vmem>>, vector<8x4xf32>,
    return
  }
  func.func @transform_0(%arg0: i32) -> (i32, i32) {
    %c0_i32 = arith.constant 0 : i32
    %c0_i32_0 = arith.constant 0 : i32
    return %arg0, %c0_i32 : i32, i32
  }
  func.func @transform_1(%arg0: i32) -> (i32, i32) {
    %c0_i32 = arith.constant 0 : i32
    %c0_i32_0 = arith.constant 0 : i32
    %c0_i32_1 = arith.constant 0 : i32
    return %c0_i32, %c0_i32_0 : i32, i32
  }
  func.func @transform_2(%arg0: i32) -> (i32, i32, i32) {
    %c0_i32 = arith.constant 0 : i32
    %c0_i32_0 = arith.constant 0 : i32
    %c0_i32_1 = arith.constant 0 : i32
    %c0_i32_2 = arith.constant 0 : i32
    return %c0_i32, %c0_i32_0, %c0_i32_1 : i32, i32, i32
  }
  func.func @transform_3(%arg0: i32) -> (i32, i32, i32) {
    %c0_i32 = arith.constant 0 : i32
    %c0_i32_0 = arith.constant 0 : i32
    %c0_i32_1 = arith.constant 0 : i32
    %c0_i32_2 = arith.constant 0 : i32
    return %c0_i32, %c0_i32_0, %c0_i32_1 : i32, i32, i32
  }
  func.func @transform_4(%arg0: i32) -> (i32, i32) {
    %c0_i32 = arith.constant 0 : i32
    %c0_i32_0 = arith.constant 0 : i32
    return %arg0, %c0_i32 : i32, i32
  }
}

</mosaic_0001>

<bundles_post_ra>
// kernel: tpu_custom_call.1
= control target key start
LH: loop header
LB: loop body
LE: loop exit
PB: predicated region body
PF: predicated region fallthrough
CT: control target
= control target key end

     0   :  { %9 = vsyncpa [#allocation3], 0  ;;  %s661_s0 = inlined_call_operand.hbm [shape: f32[8,16], index: 0, kind: input, shape index: {}]   ;;  %s662_s1 = inlined_call_operand.hbm [shape: bf16[16,128], index: 1, kind: input, shape index: {}]   ;;  %s663_s2 = inlined_call_operand.hbm [shape: bf16[3,128,128], index: 2, kind: input, shape index: {}]   ;;  %s664_s3 = inlined_call_operand.hbm [shape: f32[4,1,128], index: 3, kind: input, shape index: {}]   ;;  %s665_s4 = inlined_call_operand.vmem [shape: f32[8,4], index: 4, kind: output, shape index: {}]  }
   0x1   :  { %10 = vsyncpa [#allocation5], 0  ;;  %s27_s17 = sshll.u32 %s662_s1, 4  ;;  %s28_s17 = int_to_ptr.hbm [resolvable:$true] %s27_s17 }
   0x2   :  { %11 = vsyncpa [#allocation8], 0  ;;  %s613_s18 = smov [#allocation4]   ;;  %s17_s22 = sshll.u32 %s661_s0, 4  ;;  %s18_s22 = int_to_ptr.hbm [resolvable:$true] %s17_s22 }
   0x3   :  { %s29_s19 = sshll.u32 %s613_s18, 4  ;;  %s614_s23 = smov 64   ;;  %s30_s19 = int_to_ptr.vmem [resolvable:$true] %s29_s19 }
   0x4   :  { %s615_s24 = smov 4   ;;  %s616_s25 = smov [#allocation2]  }
   0x5   :  { %35 = dma.hbm_to_vmem [thread:$0]  %s28_s17, 128, %s30_s19, [#allocation5], %s614_s23, %s614_s23, %s615_s24  }
   0x6   :  { %s19_s26 = sshll.u32 %s616_s25, 4  ;;  %s40_s29 = sshll.u32 %s663_s2, 4  ;;  %s20_s26 = int_to_ptr.vmem [resolvable:$true] %s19_s26  ;;  %s41_s29 = int_to_ptr.hbm [resolvable:$true] %s40_s29 }
   0x7   :  { %22 = dma.hbm_to_vmem [thread:$0]  %s18_s22, 128, %s20_s26, [#allocation3]  }
   0x8   :  { %s53_s5 = sshll.u32 %s664_s3, 4  ;;  %s617_s6 = smov [#allocation6]   ;;  %s54_s5 = int_to_ptr.hbm [resolvable:$true] %s53_s5 }
   0x9   :  { %s42_s7 = sshll.u32 %s617_s6, 4  ;;  %s618_s0 = smov [#allocation7]   ;;  %s43_s7 = int_to_ptr.vmem [resolvable:$true] %s42_s7 }
   0xa   :  { %48 = dma.hbm_to_vmem [thread:$0]  %s41_s29, 3072, %s43_s7, [#allocation5], %s614_s23, %s614_s23, %s615_s24  }
   0xb   :  { %s55_s8 = sshll.u32 %s618_s0, 4  ;;  %s619_s9 = smov 16   ;;  %s56_s8 = int_to_ptr.vmem [resolvable:$true] %s55_s8 }
   0xc   :  { %s620_s10 = smov 1  }
   0xd   :  { %61 = dma.hbm_to_vmem [thread:$0]  %s54_s5, 64, %s56_s8, [#allocation8], %s619_s9, %s619_s9, %s620_s10  }
   0xe   :  { %607 = dma.done.wait [#allocation3], 128  }
   0xf   :  { %608 = vsyncadd [#allocation3], 4294967168 }
  0x10   :  { %609 = dma.done.wait [#allocation5], 3200  }
  0x11   :  { %610 = vsyncadd [#allocation5], 4294964096 }
  0x12   :  { %611 = dma.done.wait [#allocation8], 64  }
  0x13   :  { %612 = vsyncadd [#allocation8], 4294967232  ;;  %v474_v0 = vld [vmem:[#allocation4] sm:$0xff]  ;;  %v79_v1 = vld [vmem:[#allocation2] sm:$0xff]  ;;  %vm93_vm0 = vcmask 130048   ;;  %vm364_vm1 = vcmask 31744  }
  0x14   :  { %v482_v2 = vld [vmem:[#allocation6 + $0x38] sm:$0xff]  ;;  %v80_v3 = vpack.c.bf16 %v79_v1, %v79_v1  ;;  %104 = vmatpush.bf16.msra.mxu0 %v474_v0  ;;  %v481_v4 = vld [vmem:[#allocation6 + $0x30] sm:$0xff]  ;;  %v480_v5 = vld [vmem:[#allocation6 + $0x28] sm:$0xff] }
  0x15   :  { %181 = vmatpush.bf16.msra.mxu1 %v482_v2  ;;  %v479_v6 = vld [vmem:[#allocation6 + $0x20] sm:$0xff]  ;;  %v478_v7 = vld [vmem:[#allocation6 + $0x18] sm:$0xff]  ;;  %v477_v8 = vld [vmem:[#allocation6 + $0x10] sm:$0xff] }
  0x16   :  { %v476_v9 = vld [vmem:[#allocation6 + $0x8] sm:$0xff]  ;;  %v475_v10 = vld [vmem:[#allocation6] sm:$0xff]  ;;  %v490_v11 = vld [vmem:[#allocation6 + $0x78] sm:$0xff] }
  0x17   :  { %377 = vmatmul.msk.bf16.vlgmr.msra.gmra.mxu0 %vm93_vm0, %v80_v3  ;;  %266 = vmatpush.bf16.msra.mxu2 %v490_v11  ;;  %v489_v12 = vld [vmem:[#allocation6 + $0x70] sm:$0xff]  ;;  %v488_v13 = vld [vmem:[#allocation6 + $0x68] sm:$0xff]  ;;  %v487_v14 = vld [vmem:[#allocation6 + $0x60] sm:$0xff] }
  0x18   :  { %v486_v15 = vld [vmem:[#allocation6 + $0x58] sm:$0xff]  ;;  %v485_v16 = vld [vmem:[#allocation6 + $0x50] sm:$0xff]  ;;  %v507_v17 = vld [vmem:[#allocation7] ss:$0 sm:$0xff] }
  0x19   :  { %182 = vmatpush.bf16.msra.mxu1 %v481_v4  ;;  %v484_v23 = vld [vmem:[#allocation6 + $0x48] sm:$0xff]  ;;  %v483_v24 = vld [vmem:[#allocation6 + $0x40] sm:$0xff]  ;;  %v498_v25 = vld [vmem:[#allocation6 + $0xb8] sm:$0xff] }
  0x1a   :  { %351 = vmatpush.bf16.msra.mxu3 %v498_v25  ;;  %v497_v26 = vld [vmem:[#allocation6 + $0xb0] sm:$0xff]  ;;  %v496_v27 = vld [vmem:[#allocation6 + $0xa8] sm:$0xff]  ;;  %v495_v28 = vld [vmem:[#allocation6 + $0xa0] sm:$0xff] }
  0x1b   :  { %267 = vmatpush.bf16.msra.mxu2 %v489_v12  ;;  %v494_v29 = vld [vmem:[#allocation6 + $0x98] sm:$0xff]  ;;  %v493_v30 = vld [vmem:[#allocation6 + $0x90] sm:$0xff]  ;;  %v508_v31 = vld [vmem:[#allocation7 + $0x1] ss:$0 sm:$0xff] }
  0x1c   :  { %v492_v37 = vld [vmem:[#allocation6 + $0x88] sm:$0xff]  ;;  %v491_v38 = vld [vmem:[#allocation6 + $0x80] sm:$0xff] }
  0x1d   :  { %183 = vmatpush.bf16.msra.mxu1 %v480_v5  ;;  %v509_v39 = vld [vmem:[#allocation7 + $0x2] ss:$0 sm:$0xff]  ;;  %v510_v45 = vld [vmem:[#allocation7 + $0x3] ss:$0 sm:$0xff] }
  0x1e   :  { %352 = vmatpush.bf16.msra.mxu3 %v497_v26 }
  0x1f   :  { %268 = vmatpush.bf16.msra.mxu2 %v488_v13 }
  0x21   :  { %184 = vmatpush.bf16.msra.mxu1 %v479_v6 }
  0x22   :  { %353 = vmatpush.bf16.msra.mxu3 %v496_v27 }
  0x23   :  { %269 = vmatpush.bf16.msra.mxu2 %v487_v14 }
  0x25   :  { %185 = vmatpush.bf16.msra.mxu1 %v478_v7 }
  0x26   :  { %354 = vmatpush.bf16.msra.mxu3 %v495_v28 }
  0x27   :  { %270 = vmatpush.bf16.msra.mxu2 %v486_v15 }
  0x29   :  { %186 = vmatpush.bf16.msra.mxu1 %v477_v8 }
  0x2a   :  { %355 = vmatpush.bf16.msra.mxu3 %v494_v29 }
  0x2b   :  { %271 = vmatpush.bf16.msra.mxu2 %v485_v16 }
  0x2d   :  { %187 = vmatpush.bf16.msra.mxu1 %v476_v9 }
  0x2e   :  { %356 = vmatpush.bf16.msra.mxu3 %v493_v30 }
  0x2f   :  { %272 = vmatpush.bf16.msra.mxu2 %v484_v23 }
  0x31   :  { %188 = vmatpush.bf16.msra.mxu1 %v475_v10 }
  0x32   :  { %357 = vmatpush.bf16.msra.mxu3 %v492_v37 }
  0x33   :  { %273 = vmatpush.bf16.msra.mxu2 %v483_v24 }
  0x36   :  { %358 = vmatpush.bf16.msra.mxu3 %v491_v38 }
  0x94   :  { %v106_v18 = vpop.f32.mrf.mxu0 }
  0x95   :  { %v107_v19 = vadd.f32 %v507_v17, %v106_v18 }
  0x97   :  { %v110_v20 = vmax.f32 %v107_v19, 0.0 }
  0x99   :  { %v111_v21 = vpack.c.bf16 %v110_v20, %v110_v20 }
  0x9b   :  { %189 = vmatmul.bf16.vlgmr.msra.gmra.mxu1 %v111_v21 }
  0x9c   :  { %v108_v22 = vpop.f32.mrf.mxu0 }
 0x118   :  { %v190_v32 = vpop.f32.mrf.mxu1 }
 0x119   :  { %v191_v33 = vadd.f32 %v508_v31, %v190_v32 }
 0x11b   :  { %v194_v34 = vmax.f32 %v191_v33, 0.0 }
 0x11d   :  { %v195_v35 = vpack.c.bf16 %v194_v34, %v194_v34 }
 0x11f   :  { %274 = vmatmul.bf16.vlgmr.msra.gmra.mxu2 %v195_v35 }
 0x120   :  { %v192_v36 = vpop.f32.mrf.mxu1 }
 0x1a2   :  { %v275_v40 = vpop.f32.mrf.mxu2 }
 0x1a3   :  { %v276_v41 = vadd.f32 %v509_v39, %v275_v40 }
 0x1a5   :  { %v279_v42 = vmax.f32 %v276_v41, 0.0 }
 0x1a7   :  { %v280_v43 = vpack.c.bf16 %v279_v42, %v279_v42 }
 0x1a9   :  { %359 = vmatmul.bf16.vlgmr.msra.gmra.mxu3 %v280_v43 }
 0x1aa   :  { %v277_v44 = vpop.f32.mrf.mxu2 }
 0x22c   :  { %v360_v46 = vpop.f32.mrf.mxu3 }
 0x22d   :  { %v361_v47 = vadd.f32 %v510_v45, %v360_v46 }
 0x22f   :  { %365 = vst.msk [vmem:[%s665_s4] sm:$0xff] %vm364_vm1, %v361_v47 }
 0x234   :  { %v362_v48 = vpop.f32.mrf.mxu3 }
 0x235   :  { %370 = vsyncpa [#allocation3], 1 }
 0x236   :  { %371 = vsyncpa [#allocation5], 1 }
 0x237   :  { %372 = vsyncpa [#allocation8], 1 }

</bundles_post_ra>
